<compile_context>
chip_gen: v5e
topology: v5e:2x2
jax: 0.10.0
libtpu: 0.0.40
codegen_flags: <defaults>
</compile_context>

<pallas_src>
import jax
import jax.numpy as jnp
from jax import lax
from jax.experimental import pallas as pl
from jax.experimental.pallas import tpu as pltpu


# --------------------------------------------------------------------------
# Kernel
# --------------------------------------------------------------------------
def loan_mlp_kernel(idx_ref, num_ref, tcat_ref, wnum_ref, b1_ref, w23_ref,
                    b23_ref, o_ref):
    tb = idx_ref.shape[0]
    v = tcat_ref.shape[0]

    # In-kernel embedding "gather": the per-category tables were pre-folded
    # through linear1 and stacked into tcat (v, 4H); vocabulary offsets are
    # baked into the streamed indices, so a single combined one-hot (4 ones
    # per row) @ tcat reproduces concat(embedding lookups) @ W1a exactly.
    iota = lax.broadcasted_iota(jnp.int32, (tb, v), 1)
    idx = idx_ref[...]                                       # (TB, 4) int32
    hits = ((iota == idx[:, 0:1]) | (iota == idx[:, 1:2])
            | (iota == idx[:, 2:3]) | (iota == idx[:, 3:4]))
    onehot = jnp.where(hits, 1.0, 0.0).astype(tcat_ref.dtype)  # (TB, v)

    # Fused linear_in + linear1 + ReLU (f32 accumulation on the MXU).
    h = (jnp.dot(onehot, tcat_ref[...], preferred_element_type=jnp.float32)
         + jnp.dot(num_ref[...], wnum_ref[...],
                   preferred_element_type=jnp.float32)
         + b1_ref[...])
    h = jnp.maximum(h, 0.0)                                  # (TB, 4H) f32

    # Folded linear2·linear_out: RHS-stationary (4H, 1) weight -> one tiny
    # MXU weight push per grid step (no per-lane-chunk reloads of h).
    out = jnp.dot(h, w23_ref[...], preferred_element_type=jnp.float32)  # (TB,1)
    o_ref[...] = out + b23_ref[0, 0]


# --------------------------------------------------------------------------
# Parameter init (mirrors the PyTorch module's shapes)
# --------------------------------------------------------------------------
def init_params(key, hidden_size):
    h8 = hidden_size // 8
    h2 = hidden_size // 2
    ks = jax.random.split(key, 16)
    f32 = jnp.float32

    def lin(kw, kb, out_f, in_f):
        bound = 1.0 / jnp.sqrt(in_f)
        w = jax.random.uniform(kw, (out_f, in_f), f32, -bound, bound)
        b = jax.random.uniform(kb, (out_f,), f32, -bound, bound)
        return w, b

    params = {
        "emb1": jax.random.normal(ks[0], (4, h8), f32),
        "emb2": jax.random.normal(ks[1], (6, h8), f32),
        "emb3": jax.random.normal(ks[2], (7, h8), f32),
        "emb4": jax.random.normal(ks[3], (2, h8), f32),
    }
    params["w_in"], params["b_in"] = lin(ks[4], ks[5], h2, 7)
    params["w1"], params["b1"] = lin(ks[6], ks[7], hidden_size * 4, hidden_size)
    params["w2"], params["b2"] = lin(ks[8], ks[9], hidden_size, hidden_size * 4)
    params["w3"], params["b3"] = lin(ks[10], ks[11], 1, hidden_size)
    return params


# --------------------------------------------------------------------------
# Folds (computed once, not per forward call)
# --------------------------------------------------------------------------
def _round_up(x, m):
    return (x + m - 1) // m * m


def prepare_folded_params(params, hidden_size, compute_dtype=jnp.bfloat16):
    """Algebraic folds at HIGHEST precision.

    linear_in folds into linear1's numeric half, linear2·linear_out fold into
    one (4H, 1) column, and each embedding table is pre-multiplied through its
    linear1 slice so the kernel can do the gather as a tiny one-hot matmul.
    """
    f32 = jnp.float32
    HI = lax.Precision.HIGHEST
    h8 = hidden_size // 8
    h2 = hidden_size // 2

    w1_t = params["w1"].T                       # (H, 4H)
    w1a = w1_t[:h2]                             # (H/2, 4H) embedding half
    w1b = w1_t[h2:]                             # (H/2, 4H) numeric half

    emb_names = ("emb1", "emb2", "emb3", "emb4")
    tables = [jnp.dot(params[n], w1a[e * h8:(e + 1) * h8], precision=HI)
              for e, n in enumerate(emb_names)]
    t_cat = jnp.concatenate(tables, axis=0)     # (sum vocab = 19, 4H)
    vocab_total = t_cat.shape[0]
    v_pad = _round_up(vocab_total, 8)
    t_cat = jnp.pad(t_cat, ((0, v_pad - vocab_total), (0, 0)))

    offs, acc = [], 0
    for n in emb_names:
        offs.append(acc)
        acc += params[n].shape[0]
    cat_offsets = jnp.asarray(offs, jnp.int32)  # (4,)

    n_num = params["w_in"].shape[1]                                 # 7
    wnum = jnp.dot(params["w_in"].T, w1b, precision=HI)             # (7, 4H)
    wnum = jnp.pad(wnum, ((0, 8 - n_num), (0, 0)))                  # (8, 4H)
    b1f = params["b1"] + jnp.dot(params["b_in"], w1b, precision=HI)

    w3_t = params["w3"].T                                           # (H, 1)
    w23 = jnp.dot(params["w2"].T, w3_t, precision=HI)               # (4H, 1)
    b23 = (jnp.dot(params["b2"], w3_t, precision=HI)
           + params["b3"]).reshape(1, 1)

    return {
        "t_cat": t_cat.astype(compute_dtype),   # (v_pad, 4H)
        "wnum": wnum.astype(compute_dtype),     # (8, 4H)
        "b1": b1f[None, :].astype(f32),         # (1, 4H)
        "w23": w23.astype(f32),                 # (4H, 1)
        "b23": b23.astype(f32),                 # (1, 1)
        "cat_offsets": cat_offsets,             # (4,)
    }


# --------------------------------------------------------------------------
# Per-generation tiling
# --------------------------------------------------------------------------
def _vmem_budget_bytes():
    """~96 MiB on v5e/v6e (128 MiB physical VMEM), ~48 MiB on v7x (64 MiB);
    conservative fallback if the query is unavailable."""
    try:
        cap = getattr(pltpu.get_tpu_info(), "vmem_capacity_bytes", None)
    except Exception:
        cap = None
    if cap is None:
        return 48 * 1024 * 1024
    if cap >= 96 * 1024 * 1024:
        return 96 * 1024 * 1024
    return min(48 * 1024 * 1024, (cap * 3) // 4)


def _pick_block_b(B, h4, vmem_budget):
    # Per-row VMEM: f32 h intermediate (4H*4 B) + lane-padded double-buffered
    # idx/num/out tiles + one-hot scratch (conservative 4 KiB slack).
    per_row = h4 * 4 + 4096
    cap = max(128, min(8192, (vmem_budget // per_row) // 128 * 128))
    if B >= 256:
        # Keep >=2 grid steps so the "parallel" batch axis can be sharded
        # across v7x's two TensorCores.
        cap = min(cap, _round_up(pl.cdiv(B, 2), 128))
    return cap


# --------------------------------------------------------------------------
# Forward wrapper
# --------------------------------------------------------------------------
def simple_loan_model(params, num_features, cat_features, hidden_size=None, *,
                      folded=None, block_b=None, compute_dtype=jnp.bfloat16):
    """Forward pass.  Pass `folded=prepare_folded_params(...)` to avoid
    re-deriving the weight folds on every call."""
    f32 = jnp.float32
    if folded is None:
        folded = prepare_folded_params(params, hidden_size, compute_dtype)
    cdt = folded["t_cat"].dtype
    v, h4 = folded["t_cat"].shape

    # ---- glue: pack indices (+vocab offsets) and numeric features ----
    # NOTE: relies on dict insertion order of num_features matching
    # params["w_in"] column order (same assumption as the PyTorch module).
    idx = jnp.stack([
        cat_features["person_home_ownership"],
        cat_features["loan_intent"],
        cat_features["loan_grade"],
        cat_features["cb_person_default_on_file"],
    ], axis=-1).astype(jnp.int32) + folded["cat_offsets"][None, :]   # (B, 4)
    num_stacked = jnp.stack(list(num_features.values()), axis=-1).astype(f32)
    B, n_num = num_stacked.shape
    num_packed = jnp.pad(num_stacked, ((0, 0), (0, 8 - n_num))).astype(cdt)

    # ---- batch tiling (per-generation VMEM budget, 128-aligned tiles) ----
    vmem_budget = _vmem_budget_bytes()
    tb = block_b if block_b is not None else _pick_block_b(B, h4, vmem_budget)
    if tb >= B:
        TB = _round_up(B, 8)              # single tile covers the padded batch
    else:
        TB = max(128, (tb // 128) * 128)  # 128-aligned interior tiles
    B_pad = _round_up(B, TB)
    G = B_pad // TB
    if B_pad != B:
        idx = jnp.pad(idx, ((0, B_pad - B), (0, 0)))
        num_packed = jnp.pad(num_packed, ((0, B_pad - B), (0, 0)))

    def const(shape):
        return pl.BlockSpec(shape, lambda i: (0, 0))

    out = pl.pallas_call(
        loan_mlp_kernel,
        out_shape=jax.ShapeDtypeStruct((B_pad, 1), f32),
        grid=(G,),
        in_specs=[
            pl.BlockSpec((TB, 4), lambda i: (i, 0)),   # categorical indices
            pl.BlockSpec((TB, 8), lambda i: (i, 0)),   # numeric features
            const((v, h4)),                            # folded embedding tables
            const((8, h4)),                            # folded linear_in·W1b
            const((1, h4)),                            # folded bias b1'
            const((h4, 1)),                            # folded W2ᵀ·W3ᵀ
            pl.BlockSpec((1, 1), lambda i: (0, 0),
                         memory_space=pltpu.MemorySpace.SMEM),  # b23 scalar
        ],
        out_specs=pl.BlockSpec((TB, 1), lambda i: (i, 0)),
        compiler_params=pltpu.CompilerParams(
            dimension_semantics=("parallel",),
            vmem_limit_bytes=vmem_budget),
    )(idx, num_packed, folded["t_cat"], folded["wnum"], folded["b1"],
      folded["w23"], folded["b23"])

    # Padded rows compute garbage and are discarded here.
    return out.reshape(-1)[:B]


# --------------------------------------------------------------------------
# Pure-JAX reference (matches the PyTorch forward semantics)
# --------------------------------------------------------------------------
def reference_forward(params, num_features, cat_features):
    x_1 = jnp.take(params["emb1"], cat_features["person_home_ownership"], axis=0)
    x_2 = jnp.take(params["emb2"], cat_features["loan_intent"], axis=0)
    x_3 = jnp.take(params["emb3"], cat_features["loan_grade"], axis=0)
    x_4 = jnp.take(params["emb4"], cat_features["cb_person_default_on_file"], axis=0)
    x_num = jnp.stack(list(num_features.values()), axis=-1).astype(jnp.float32)
    x_num = x_num @ params["w_in"].T + params["b_in"]
    x = jnp.concatenate([x_1, x_2, x_3, x_4, x_num], axis=-1)
    x = jnp.maximum(x @ params["w1"].T + params["b1"], 0.0)
    x = x @ params["w2"].T + params["b2"]
    x = x @ params["w3"].T + params["b3"]
    return x.squeeze(-1)


if __name__ == "__main__":
    hidden_size = 32
    B = 8

    key = jax.random.PRNGKey(0)
    kp, kn, kc, kn2, kc2 = jax.random.split(key, 5)
    params = init_params(kp, hidden_size)

    num_names = ["person_age", "person_income", "person_emp_length",
                 "loan_amnt", "loan_int_rate", "loan_percent_income",
                 "cb_person_cred_hist_length"]

    def make_features(knum, kcat, batch):
        nks = jax.random.split(knum, len(num_names))
        nf = {name: jax.random.normal(k, (batch,), jnp.float32)
              for name, k in zip(num_names, nks)}
        cks = jax.random.split(kcat, 4)
        cf = {
            "person_home_ownership": jax.random.randint(cks[0], (batch,), 0, 4),
            "loan_intent": jax.random.randint(cks[1], (batch,), 0, 6),
            "loan_grade": jax.random.randint(cks[2], (batch,), 0, 7),
            "cb_person_default_on_file": jax.random.randint(cks[3], (batch,), 0, 2),
        }
        return nf, cf

    num_features, cat_features = make_features(kn, kc, B)

    # Folds computed once (hoisted out of the per-call path).
    folded_bf16 = prepare_folded_params(params, hidden_size, jnp.bfloat16)
    folded_f32 = prepare_folded_params(params, hidden_size, jnp.float32)

    ref = reference_forward(params, num_features, cat_features)

    # bf16 streamed activations / weights (default), f32 accumulation.
    out = jax.block_until_ready(
        simple_loan_model(params, num_features, cat_features, hidden_size,
                          folded=folded_bf16))
    assert out.shape == (B,)
    assert jnp.allclose(out, ref, atol=5e-2, rtol=5e-2), (out, ref)

    # f32 compute path, tight tolerance.
    out32 = jax.block_until_ready(
        simple_loan_model(params, num_features, cat_features, hidden_size,
                          folded=folded_f32))
    assert jnp.allclose(out32, ref, atol=1e-3, rtol=1e-3), (out32, ref)

    # Larger batch: exercises 128-aligned multi-step tiling + tail padding.
    B2 = 600
    nf2, cf2 = make_features(kn2, kc2, B2)
    out2 = jax.block_until_ready(
        simple_loan_model(params, nf2, cf2, hidden_size, folded=folded_bf16))
    ref2 = reference_forward(params, nf2, cf2)
    assert out2.shape == (B2,)
    assert jnp.allclose(out2, ref2, atol=5e-2, rtol=5e-2), (out2, ref2)

    print("KERNEL_OK")
</pallas_src>

<mosaic_0001>
module attributes {stable_mosaic.version = 11 : i64} {
  func.func @loan_mlp_kernel(%arg0: i32, %arg1: memref<8x4xi32, #tpu.memory_space<vmem>>, %arg2: memref<8x8xbf16, #tpu.memory_space<vmem>>, %arg3: memref<24x128xbf16, #tpu.memory_space<vmem>>, %arg4: memref<8x128xbf16, #tpu.memory_space<vmem>>, %arg5: memref<1x128xf32, #tpu.memory_space<vmem>>, %arg6: memref<128x1xf32, #tpu.memory_space<vmem>>, %arg7: memref<1x1xf32, #tpu.memory_space<smem>>, %arg8: memref<8x1xf32, #tpu.memory_space<vmem>>) attributes {dimension_semantics = [#tpu.dimension_semantics<parallel>], iteration_bounds = array<i64: 1>, scalar_prefetch = 0 : i64, scratch_operands = 0 : i64, tpu.core_type = #tpu.core_type<tc>, window_params = [{transform_indices = @transform_0, window_bounds = array<i64: 8, 4>}, {transform_indices = @transform_1, window_bounds = array<i64: 8, 8>}, {pipeline_mode = #tpu.pipeline_mode<synchronous>, transform_indices = @transform_2, window_bounds = array<i64: 24, 128>}, {pipeline_mode = #tpu.pipeline_mode<synchronous>, transform_indices = @transform_3, window_bounds = array<i64: 8, 128>}, {pipeline_mode = #tpu.pipeline_mode<synchronous>, transform_indices = @transform_4, window_bounds = array<i64: 1, 128>}, {pipeline_mode = #tpu.pipeline_mode<synchronous>, transform_indices = @transform_5, window_bounds = array<i64: 128, 1>}, {transform_indices = @transform_6, window_bounds = array<i64: 1, 1>}, {transform_indices = @transform_7, window_bounds = array<i64: 8, 1>}]} {
    %0 = tpu.iota {dimensions = array<i32: 1>} : vector<8x24xi32>
    %c0 = arith.constant 0 : index
    %c0_0 = arith.constant 0 : index
    %1 = vector.load %arg1[%c0, %c0_0] : memref<8x4xi32, #tpu.memory_space<vmem>>, vector<8x4xi32>
    %2 = vector.extract_strided_slice %1 {offsets = [0, 0], sizes = [8, 1], strides = [1, 1]} : vector<8x4xi32> to vector<8x1xi32>
    %3 = vector.broadcast %2 : vector<8x1xi32> to vector<8x24xi32>
    %4 = arith.cmpi eq, %0, %3 : vector<8x24xi32>
    %5 = vector.extract_strided_slice %1 {offsets = [0, 1], sizes = [8, 1], strides = [1, 1]} : vector<8x4xi32> to vector<8x1xi32>
    %6 = vector.broadcast %5 : vector<8x1xi32> to vector<8x24xi32>
    %7 = arith.cmpi eq, %0, %6 : vector<8x24xi32>
    %8 = arith.ori %4, %7 : vector<8x24xi1>
    %9 = vector.extract_strided_slice %1 {offsets = [0, 2], sizes = [8, 1], strides = [1, 1]} : vector<8x4xi32> to vector<8x1xi32>
    %10 = vector.broadcast %9 : vector<8x1xi32> to vector<8x24xi32>
    %11 = arith.cmpi eq, %0, %10 : vector<8x24xi32>
    %12 = arith.ori %8, %11 : vector<8x24xi1>
    %13 = vector.extract_strided_slice %1 {offsets = [0, 3], sizes = [8, 1], strides = [1, 1]} : vector<8x4xi32> to vector<8x1xi32>
    %14 = vector.broadcast %13 : vector<8x1xi32> to vector<8x24xi32>
    %15 = arith.cmpi eq, %0, %14 : vector<8x24xi32>
    %16 = arith.ori %12, %15 : vector<8x24xi1>
    %cst = arith.constant 1.000000e+00 : f32
    %cst_1 = arith.constant 0.000000e+00 : f32
    %17 = vector.broadcast %cst : f32 to vector<8x24xf32>
    %18 = vector.broadcast %cst_1 : f32 to vector<8x24xf32>
    %19 = arith.select %16, %17, %18 : vector<8x24xi1>, vector<8x24xf32>
    %20 = arith.truncf %19 : vector<8x24xf32> to vector<8x24xbf16>
    %c0_2 = arith.constant 0 : index
    %c0_3 = arith.constant 0 : index
    %21 = vector.load %arg3[%c0_2, %c0_3] : memref<24x128xbf16, #tpu.memory_space<vmem>>, vector<24x128xbf16>
    %cst_4 = arith.constant dense<0.000000e+00> : vector<8x128xf32>
    %22 = tpu.matmul %20, %21, %cst_4 {dimension_numbers = #tpu.dot_dimension_numbers<[1], [0], [0], [1], [0, 0, 1, 1], [], []>} : vector<8x24xbf16>, vector<24x128xbf16>, vector<8x128xf32> -> vector<8x128xf32>
    %c0_5 = arith.constant 0 : index
    %c0_6 = arith.constant 0 : index
    %23 = vector.load %arg2[%c0_5, %c0_6] : memref<8x8xbf16, #tpu.memory_space<vmem>>, vector<8x8xbf16>
    %c0_7 = arith.constant 0 : index
    %c0_8 = arith.constant 0 : index
    %24 = vector.load %arg4[%c0_7, %c0_8] : memref<8x128xbf16, #tpu.memory_space<vmem>>, vector<8x128xbf16>
    %cst_9 = arith.constant dense<0.000000e+00> : vector<8x128xf32>
    %25 = tpu.matmul %23, %24, %cst_9 {dimension_numbers = #tpu.dot_dimension_numbers<[1], [0], [0], [1], [0, 0, 1, 1], [], []>} : vector<8x8xbf16>, vector<8x128xbf16>, vector<8x128xf32> -> vector<8x128xf32>
    %26 = arith.addf %22, %25 : vector<8x128xf32>
    %c0_10 = arith.constant 0 : index
    %c0_11 = arith.constant 0 : index
    %27 = vector.load %arg5[%c0_10, %c0_11] : memref<1x128xf32, #tpu.memory_space<vmem>>, vector<1x128xf32>
    %28 = vector.broadcast %27 : vector<1x128xf32> to vector<8x128xf32>
    %29 = arith.addf %26, %28 : vector<8x128xf32>
    %cst_12 = arith.constant 0.000000e+00 : f32
    %30 = vector.broadcast %cst_12 : f32 to vector<8x128xf32>
    %31 = arith.maximumf %29, %30 : vector<8x128xf32>
    %c0_13 = arith.constant 0 : index
    %c0_14 = arith.constant 0 : index
    %32 = vector.load %arg6[%c0_13, %c0_14] : memref<128x1xf32, #tpu.memory_space<vmem>>, vector<128x1xf32>
    %cst_15 = arith.constant dense<0.000000e+00> : vector<8x1xf32>
    %33 = tpu.matmul %31, %32, %cst_15 {dimension_numbers = #tpu.dot_dimension_numbers<[1], [0], [0], [1], [0, 0, 1, 1], [], []>} : vector<8x128xf32>, vector<128x1xf32>, vector<8x1xf32> -> vector<8x1xf32>
    %c0_16 = arith.constant 0 : index
    %c0_17 = arith.constant 0 : index
    %34 = memref.load %arg7[%c0_16, %c0_17] : memref<1x1xf32, #tpu.memory_space<smem>>
    %35 = vector.broadcast %34 : f32 to vector<8x1xf32>
    %36 = arith.addf %33, %35 : vector<8x1xf32>
    %c0_18 = arith.constant 0 : index
    %c0_19 = arith.constant 0 : index
    %37 = vector.load %arg8[%c0_18, %c0_19] : memref<8x1xf32, #tpu.memory_space<vmem>>, vector<8x1xf32>
    tpu.vector_store %arg8[%c0_18, %c0_19], %36 {strides = array<i32>} : memref<8x1xf32, #tpu.memory_space<vmem>>, vector<8x1xf32>,
    return
  }
  func.func @transform_0(%arg0: i32) -> (i32, i32) {
    %c0_i32 = arith.constant 0 : i32
    %c0_i32_0 = arith.constant 0 : i32
    return %arg0, %c0_i32 : i32, i32
  }
  func.func @transform_1(%arg0: i32) -> (i32, i32) {
    %c0_i32 = arith.constant 0 : i32
    %c0_i32_0 = arith.constant 0 : i32
    return %arg0, %c0_i32 : i32, i32
  }
  func.func @transform_2(%arg0: i32) -> (i32, i32) {
    %c0_i32 = arith.constant 0 : i32
    %c0_i32_0 = arith.constant 0 : i32
    %c0_i32_1 = arith.constant 0 : i32
    return %c0_i32, %c0_i32_0 : i32, i32
  }
  func.func @transform_3(%arg0: i32) -> (i32, i32) {
    %c0_i32 = arith.constant 0 : i32
    %c0_i32_0 = arith.constant 0 : i32
    %c0_i32_1 = arith.constant 0 : i32
    return %c0_i32, %c0_i32_0 : i32, i32
  }
  func.func @transform_4(%arg0: i32) -> (i32, i32) {
    %c0_i32 = arith.constant 0 : i32
    %c0_i32_0 = arith.constant 0 : i32
    %c0_i32_1 = arith.constant 0 : i32
    return %c0_i32, %c0_i32_0 : i32, i32
  }
  func.func @transform_5(%arg0: i32) -> (i32, i32) {
    %c0_i32 = arith.constant 0 : i32
    %c0_i32_0 = arith.constant 0 : i32
    %c0_i32_1 = arith.constant 0 : i32
    return %c0_i32, %c0_i32_0 : i32, i32
  }
  func.func @transform_6(%arg0: i32) -> (i32, i32) {
    %c0_i32 = arith.constant 0 : i32
    %c0_i32_0 = arith.constant 0 : i32
    %c0_i32_1 = arith.constant 0 : i32
    return %c0_i32, %c0_i32_0 : i32, i32
  }
  func.func @transform_7(%arg0: i32) -> (i32, i32) {
    %c0_i32 = arith.constant 0 : i32
    %c0_i32_0 = arith.constant 0 : i32
    return %arg0, %c0_i32 : i32, i32
  }
}

</mosaic_0001>

<bundles_post_ra>
// kernel: tpu_custom_call.1
= control target key start
LH: loop header
LB: loop body
LE: loop exit
PB: predicated region body
PF: predicated region fallthrough
CT: control target
= control target key end

     0   :  { %v175_v0 = vmov 0   ;;  %v176_v2 = vmov 2   ;;  %v177_v3 = vmov 1   ;;  %v178_v4 = vmov 3   ;;  %s292_s0 = inlined_call_operand.vmem [shape: s32[8,4], index: 0, kind: input, shape index: {}]   ;;  %s293_s3 = inlined_call_operand.vmem [shape: bf16[8,128], index: 3, kind: input, shape index: {}]   ;;  %s294_s1 = inlined_call_operand.vmem [shape: bf16[8,8], index: 1, kind: input, shape index: {}]   ;;  %s295_s2 = inlined_call_operand.vmem [shape: bf16[24,128], index: 2, kind: input, shape index: {}]   ;;  %s296_s5 = inlined_call_operand.vmem [shape: f32[128,1], index: 5, kind: input, shape index: {}]   ;;  %s297_s4 = inlined_call_operand.vmem [shape: f32[1,128], index: 4, kind: input, shape index: {}]   ;;  %s298_s6 = inlined_call_operand.<no memory space> [shape: f32[1,1], index: 6, kind: input, shape index: {}]   ;;  %s299_s7 = inlined_call_operand.vmem [shape: f32[8,1], index: 7, kind: output, shape index: {}]  }
   0x1   :  { %169 = vset.pattern.permute.xlu0 %v175_v0  ;;  %v30_v1 = vld [vmem:[%s292_s0] sm:$0xff]  ;;  %171 = vset.pattern.permute.xlu1 %v176_v2  ;;  %vm61_vm0 = vcmask 1043456   ;;  %vm57_vm1 = vcmask 64512   ;;  %v54_v8 = vld [vmem:[%s295_s2 + $0x8] sm:$0xf]  ;;  %v128_v13 = vld [vmem:[%s296_s5 + $0x78] sm:$0xff]  ;;  %v28_v23 = vlaneseq  ;;  %v130_v46 = vstv %s298_s6 }
   0x2   :  { %32 = vperm.xlu0 %169, %v30_v1   ;;  %41 = vperm.xlu1 %171, %v30_v1   ;;  %v56_v5 = vld [vmem:[%s293_s3] sm:$0xf]  ;;  %v83_v9 = vunpack.c.l.b16 %v54_v8  ;;  %v127_v14 = vld [vmem:[%s296_s5 + $0x70] sm:$0xff]  ;;  %v126_v15 = vld [vmem:[%s296_s5 + $0x68] sm:$0xff]  ;;  %v179_v27 = vmov 0.0   ;;  %vm87_vm9 = vcmask 195584  }
   0x3   :  { %v63_v6 = vsel %vm61_vm0, %v56_v5, 0  ;;  %v55_v7 = vld [vmem:[%s294_s1] sm:$0xf]  ;;  %131 = vmatpush.msra.mxu2 %v128_v13  ;;  %v124_v17 = vld [vmem:[%s296_s5 + $0x58] sm:$0xff]  ;;  %v123_v18 = vld [vmem:[%s296_s5 + $0x50] sm:$0xff]  ;;  %v29_v24 = vand.u32 127, %v28_v23 }
   0x4   :  { %72 = vmatpush.bf16.msra.mxu0 %v63_v6  ;;  %v85_v10 = vpack.c.b16 %v83_v9, %v83_v9  ;;  %v163_v12 = vld [vmem:[%s295_s2] sm:$0xff]  ;;  %v122_v19 = vld [vmem:[%s296_s5 + $0x48] sm:$0xff]  ;;  %v120_v30 = vld [vmem:[%s296_s5 + $0x38] sm:$0xff]  ;;  %vm151_vm10 = vcmask 7168  }
   0x5   :  { %132 = vmatpush.msra.mxu2 %v127_v14  ;;  %v125_v16 = vld [vmem:[%s296_s5 + $0x60] sm:$0xff]  ;;  %v119_v31 = vld [vmem:[%s296_s5 + $0x30] sm:$0xff]  ;;  %v118_v32 = vld [vmem:[%s296_s5 + $0x28] sm:$0xff] }
   0x6   :  { %v92_v11 = vsel %vm61_vm0, %v85_v10, 0  ;;  %v121_v20 = vld [vmem:[%s296_s5 + $0x40] sm:$0xff]  ;;  %v116_v36 = vld [vmem:[%s296_s5 + $0x18] sm:$0xff]  ;;  %v115_v37 = vld [vmem:[%s296_s5 + $0x10] sm:$0xff] }
   0x7   :  { %157 = vmatmul.msk.bf16.vlgmr.msra.gmra.mxu0 %vm57_vm1, %v55_v7  ;;  %100 = vmatpush.bf16.msra.mxu1 %v92_v11  ;;  %v117_v33 = vld [vmem:[%s296_s5 + $0x20] sm:$0xff]  ;;  %v114_v38 = vld [vmem:[%s296_s5 + $0x8] sm:$0xff] }
   0x8   :  { %133 = vmatpush.msra.mxu2 %v126_v15  ;;  %v113_v39 = vld [vmem:[%s296_s5] sm:$0xff] }
   0x9   :  { %v174_v40 = vld [vmem:[%s297_s4] ss:$0 sm:$0xff] }
   0xa   :  { %170 = vset.pattern.permute.xlu0 %v177_v3  ;;  %172 = vset.pattern.permute.xlu1 %v178_v4 }
   0xb   :  { %36 = vperm.xlu0 %170, %v30_v1   ;;  %46 = vperm.xlu1 %172, %v30_v1  }
   0xc   :  { %101 = vmatpush.bf16.msra.mxu1 %v163_v12  ;;  %134 = vmatpush.msra.mxu2 %v125_v16 }
   0xe   :  { %135 = vmatpush.msra.mxu2 %v124_v17 }
  0x10   :  { %136 = vmatpush.msra.mxu2 %v123_v18 }
  0x12   :  { %137 = vmatpush.msra.mxu2 %v122_v19 }
  0x13   :  { %173 = vset.pattern.permute.xlu0 %v178_v4 }
  0x14   :  { %138 = vmatpush.msra.mxu2 %v121_v20 }
  0x16   :  { %139 = vmatpush.msra.mxu2 %v120_v30 }
  0x18   :  { %140 = vmatpush.msra.mxu2 %v119_v31 }
  0x1a   :  { %141 = vmatpush.msra.mxu2 %v118_v32 }
  0x1c   :  { %142 = vmatpush.msra.mxu2 %v117_v33 }
  0x1e   :  { %143 = vmatpush.msra.mxu2 %v116_v36 }
  0x20   :  { %144 = vmatpush.msra.mxu2 %v115_v37 }
  0x22   :  { %145 = vmatpush.msra.mxu2 %v114_v38 }
  0x24   :  { %146 = vmatpush.msra.mxu2 %v113_v39 }
  0x74   :  { %v33_v21 = vpop.permute.xlu0 %32  ;;  %v42_v22 = vpop.permute.xlu1 %41 }
  0x75   :  { %vm34_vm2 = vcmp.eq.s32.totalorder %v29_v24, %v33_v21  ;;  %vm43_vm5 = vcmp.eq.s32.totalorder %v29_v24, %v42_v22 }
  0x7d   :  { %v37_v25 = vpop.permute.xlu0 %36  ;;  %v47_v26 = vpop.permute.xlu1 %46 }
  0x7e   :  { %vm38_vm3 = vcmp.eq.s32.totalorder %v29_v24, %v37_v25  ;;  %vm48_vm4 = vcmp.eq.s32.totalorder %v29_v24, %v47_v26 }
  0x7f   :  { %vm39_vm6 = vmor %vm34_vm2, %vm38_vm3 }
  0x80   :  { %vm44_vm7 = vmor %vm39_vm6, %vm43_vm5 }
  0x81   :  { %vm49_vm8 = vmor %vm44_vm7, %vm48_vm4 }
  0x82   :  { %v50_v28 = vsel %vm49_vm8, 1.0, %v179_v27 }
  0x83   :  { %v51_v29 = vpack.c.bf16 %v50_v28, %v50_v28 }
  0x84   :  { %v74_v34 = vpop.f32.mrf.mxu0 }
  0x85   :  { %162 = vmatmul.msk.bf16.vlgmr.msra.gmra.mxu1 %vm87_vm9, %v51_v29 }
  0x8c   :  { %v76_v35 = vpop.f32.mrf.mxu0 }
 0x102   :  { %v103_v41 = vpop.f32.mrf.mxu1 }
 0x103   :  { %v104_v42 = vadd.f32 %v103_v41, %v74_v34 }
 0x105   :  { %v111_v43 = vadd.f32 %v174_v40, %v104_v42 }
 0x107   :  { %v112_v44 = vmax.f32 %v111_v43, 0.0 }
 0x109   :  { %147 = vmatmul.f32.vlgmr.msra.gmra.mxu2 %v112_v44 }
 0x10a   :  { %v105_v45 = vpop.f32.mrf.mxu1 }
 0x18c   :  { %v148_v47 = vpop.f32.mrf.mxu2 }
 0x18d   :  { %v149_v48 = vadd.f32 %v148_v47, %v130_v46 }
 0x18f   :  { %152 = vst.msk [vmem:[%s299_s7] sm:$0xff] %vm151_vm10, %v149_v48 }

</bundles_post_ra>
